<compile_context>
chip_gen: v7x
topology: tpu7x:2x2x1
jax: 0.10.0
libtpu: 0.0.40
codegen_flags: <defaults>
</compile_context>

<pallas_src>
import jax
import jax.numpy as jnp
import numpy as np
from jax import lax
from jax.experimental import pallas as pl
from jax.experimental.pallas import tpu as pltpu

# Small, module-consistent sizes (n_embd=768 in the source; scaled down here).
N_EMBD = 64
NUM_HEADS = 4
HEAD_SIZE = 16


# ---------------------------------------------------------------------------
# helpers
# ---------------------------------------------------------------------------
def _pick_tile(total, target):
    """Largest tile <= target that divides `total` and is a multiple of 8
    (falls back to the full extent, which is always layout-legal)."""
    if total <= target:
        return total
    cand = (min(target, total) // 8) * 8
    while cand >= 8:
        if total % cand == 0:
            return cand
        cand -= 8
    return total


def _vmem_limit(resident_bytes):
    """Scoped-VMEM limit sized from the actual block footprint (+slack),
    clamped so the request is valid on every generation (v7x physical = 64 MiB)."""
    need = 4 * int(resident_bytes) + (4 << 20)
    return int(min(max(need, 16 << 20), 48 << 20))


# ---------------------------------------------------------------------------
# kernel 1: fused, lane-dense QKV projection
# ---------------------------------------------------------------------------
def _qkv_proj_kernel(x_ref, w_ref, o_ref):
    # x_ref: (1, Tt, C)   w_ref: (C, 3*H*hs)   o_ref: (1, Tt, 3*H*hs)
    o_ref[0] = jnp.dot(x_ref[0], w_ref[...],
                       preferred_element_type=jnp.float32).astype(o_ref.dtype)


def _qkv_projection(x, w_qkv, t_tile, *, single_buffer_w):
    B, T, C = x.shape
    K3 = w_qkv.shape[-1]
    isz = x.dtype.itemsize
    w_kwargs = dict(pipeline_mode=pl.Buffered(1)) if single_buffer_w else {}
    resident = (2 * t_tile * C
                + (1 if single_buffer_w else 2) * C * K3
                + 2 * t_tile * K3) * isz
    return pl.pallas_call(
        _qkv_proj_kernel,
        out_shape=jax.ShapeDtypeStruct((B, T, K3), x.dtype),
        grid_spec=pltpu.PrefetchScalarGridSpec(
            num_scalar_prefetch=0,
            grid=(B, T // t_tile),
            in_specs=[
                pl.BlockSpec((1, t_tile, C), lambda b, t: (b, t, 0)),
                # Grid-invariant weight block: fetched once; single-buffered
                # so a dead second copy does not eat VMEM headroom.
                pl.BlockSpec((C, K3), lambda b, t: (0, 0), **w_kwargs),
            ],
            out_specs=pl.BlockSpec((1, t_tile, K3), lambda b, t: (b, t, 0)),
        ),
        compiler_params=pltpu.CompilerParams(
            dimension_semantics=("parallel", "parallel"),
            vmem_limit_bytes=_vmem_limit(resident)),
    )(x, w_qkv)


# ---------------------------------------------------------------------------
# kernel 2: flash attention (online softmax over KV tiles)
# ---------------------------------------------------------------------------
def _flash_attn_kernel(q_ref, k_ref, v_ref, o_ref, m_sc, l_sc, acc_sc):
    ki = pl.program_id(3)

    @pl.when(ki == 0)
    def _init():
        m_sc[...] = jnp.full(m_sc.shape, -jnp.inf, m_sc.dtype)
        l_sc[...] = jnp.zeros(l_sc.shape, l_sc.dtype)
        acc_sc[...] = jnp.zeros(acc_sc.shape, acc_sc.dtype)

    q = q_ref[0, 0]                      # (tq, hs); 1/sqrt(hs) already in Wq
    k = k_ref[0, 0]                      # (tk, hs)
    v = v_ref[0, 0]                      # (tk, hs)

    # Contract the last dims of q and k (MXU-native form, no explicit k.T
    # array materialized in the kernel source).
    # TODO(synk): confirm via pl.lower_as_mlir at real sizes that Mosaic does
    # not insert a hidden XLU transpose here; if it does, transpose k once per
    # KV tile into an (hs, tk) scratch instead of per Q-tile.
    s = lax.dot_general(q, k, dimension_numbers=(((1,), (1,)), ((), ())),
                        preferred_element_type=jnp.float32)    # (tq, tk) f32

    m_prev = m_sc[...]
    m_new = jnp.maximum(m_prev, jnp.max(s, axis=-1, keepdims=True))
    alpha = jnp.exp(m_prev - m_new)              # rescale of previous partials
    p = jnp.exp(s - m_new)                       # f32 softmax math on all gens
    l_sc[...] = alpha * l_sc[...] + jnp.sum(p, axis=-1, keepdims=True)
    acc_sc[...] = alpha * acc_sc[...] + jnp.dot(
        p.astype(v.dtype), v, preferred_element_type=jnp.float32)
    m_sc[...] = m_new

    @pl.when(ki == pl.num_programs(3) - 1)
    def _finalize():
        # Denominator is only (tq, 1) values: the exact reciprocal is free
        # relative to the matmuls and keeps tight agreement with the reference
        # (the win over a divide is the recip+vmul structure, not approx).
        o_ref[0, 0] = (acc_sc[...] * pl.reciprocal(l_sc[...], approx=False)
                       ).astype(o_ref.dtype)


def _flash_attention(q, k, v, tq, tk):
    B, H, T, hs = q.shape
    isz = q.dtype.itemsize
    resident = ((2 * tq * hs + 4 * tk * hs) * isz     # q + k,v double-buffered
                + 2 * tq * hs * 4                     # output block
                + (2 * tq + tq * hs) * 4)             # f32 scratch
    return pl.pallas_call(
        _flash_attn_kernel,
        out_shape=jax.ShapeDtypeStruct((B, H, T, hs), jnp.float32),
        grid_spec=pltpu.PrefetchScalarGridSpec(
            num_scalar_prefetch=0,
            grid=(B, H, T // tq, T // tk),            # KV reduction axis last
            in_specs=[
                pl.BlockSpec((1, 1, tq, hs), lambda b, h, qi, ki: (b, h, qi, 0)),
                pl.BlockSpec((1, 1, tk, hs), lambda b, h, qi, ki: (b, h, ki, 0)),
                pl.BlockSpec((1, 1, tk, hs), lambda b, h, qi, ki: (b, h, ki, 0)),
            ],
            out_specs=pl.BlockSpec((1, 1, tq, hs),
                                   lambda b, h, qi, ki: (b, h, qi, 0)),
            scratch_shapes=[
                pltpu.VMEM((tq, 1), jnp.float32),    # running max
                pltpu.VMEM((tq, 1), jnp.float32),    # running sum
                pltpu.VMEM((tq, hs), jnp.float32),   # output accumulator
            ],
        ),
        compiler_params=pltpu.CompilerParams(
            dimension_semantics=("parallel", "parallel", "parallel",
                                 "arbitrary"),
            vmem_limit_bytes=_vmem_limit(resident)),
    )(q, k, v)


# ---------------------------------------------------------------------------
# public wrapper
# ---------------------------------------------------------------------------
def multi_head_attention(x, wq, wk, wv, *, mxu_dtype=jnp.float32,
                         q_tile=256, kv_tile=512):
    """x: (B, T, C); wq/wk/wv: (H, C, head_size).

    Returns (B, T, H * head_size) f32 — equivalent to
    torch.cat([head_h(x) for h in heads], dim=-1).
    """
    B, T, C = x.shape
    H, C2, hs = wq.shape
    assert C == C2

    # Fold the 1/sqrt(hs) softmax scale into Wq (free at trace time).
    scale = float(hs) ** -0.5

    def _stack(w):                        # (H, C, hs) -> (C, H*hs) head-major
        return jnp.transpose(w, (1, 0, 2)).reshape(C, H * hs)

    w_qkv = jnp.concatenate(
        [_stack(wq * scale), _stack(wk), _stack(wv)], axis=-1).astype(mxu_dtype)
    x_in = x.astype(mxu_dtype)            # bf16 MXU operands on v6e/v7x

    # --- kernel 1: lane-dense QKV projection --------------------------------
    t_proj = _pick_tile(T, max(q_tile, 256))
    try:
        qkv = _qkv_projection(x_in, w_qkv, t_proj, single_buffer_w=True)
    except Exception:
        # TODO(synk): fallback for jax builds that reject Buffered(1) on a
        # pallas_call BlockSpec; costs one extra (C, 3*H*hs) VMEM buffer.
        qkv = _qkv_projection(x_in, w_qkv, t_proj, single_buffer_w=False)

    # Layout plumbing (XLA, outside the kernels): split heads so the flash
    # kernel's BlockSpecs see lane-dense (T, hs) tiles per (batch, head).
    q, k, v = jnp.transpose(qkv.reshape(B, T, 3, H, hs), (2, 0, 3, 1, 4))

    # --- kernel 2: flash attention ------------------------------------------
    tq = _pick_tile(T, q_tile)
    tk = _pick_tile(T, kv_tile)
    out = _flash_attention(q, k, v, tq, tk)          # (B, H, T, hs) f32

    # Concatenate heads: (B, H, T, hs) -> (B, T, H*hs).
    return jnp.transpose(out, (0, 2, 1, 3)).reshape(B, T, H * hs)


def reference_mha(x, wq, wk, wv):
    """Pure-JAX reference mirroring the PyTorch forward exactly."""
    outs = []
    for h in range(wq.shape[0]):
        q = x @ wq[h]
        k = x @ wk[h]
        v = x @ wv[h]
        wei = (q @ jnp.swapaxes(k, -2, -1)) * (k.shape[-1] ** -0.5)
        wei = jax.nn.softmax(wei, axis=-1)
        outs.append(wei @ v)
    return jnp.concatenate(outs, axis=-1)


if __name__ == "__main__":
    key = jax.random.PRNGKey(0)
    kx, kq, kk, kv = jax.random.split(key, 4)

    B, T = 2, 8
    x = jax.random.normal(kx, (B, T, N_EMBD), dtype=jnp.float32)

    # Deterministic weight init (torch Linear uses U(-1/sqrt(C), 1/sqrt(C))).
    bound = 1.0 / np.sqrt(N_EMBD)
    wq = jax.random.uniform(kq, (NUM_HEADS, N_EMBD, HEAD_SIZE),
                            minval=-bound, maxval=bound, dtype=jnp.float32)
    wk = jax.random.uniform(kk, (NUM_HEADS, N_EMBD, HEAD_SIZE),
                            minval=-bound, maxval=bound, dtype=jnp.float32)
    wv = jax.random.uniform(kv, (NUM_HEADS, N_EMBD, HEAD_SIZE),
                            minval=-bound, maxval=bound, dtype=jnp.float32)
    # TODO(synk): self.proj (Linear(H*hs, n_embd)) is initialized in __init__
    # but never applied in forward(), so it is intentionally not used here.

    ref = reference_mha(x, wq, wk, wv)

    # f32 path: exact reciprocal restores tight agreement with the reference.
    out_f32 = jax.block_until_ready(
        multi_head_attention(x, wq, wk, wv, mxu_dtype=jnp.float32))
    np.testing.assert_allclose(np.asarray(out_f32), np.asarray(ref),
                               rtol=1e-4, atol=1e-4)

    # bf16 MXU-operand path (v6e/v7x fast path); softmax math stays f32.
    out_bf16 = jax.block_until_ready(
        multi_head_attention(x, wq, wk, wv, mxu_dtype=jnp.bfloat16))
    np.testing.assert_allclose(np.asarray(out_bf16), np.asarray(ref),
                               rtol=5e-2, atol=5e-2)

    print("KERNEL_OK")
</pallas_src>

<mosaic_0001>
module attributes {stable_mosaic.version = 11 : i64} {
  func.func @_qkv_proj_kernel(%arg0: i32, %arg1: i32, %arg2: memref<1x8x64xf32, #tpu.memory_space<vmem>>, %arg3: memref<64x192xf32, #tpu.memory_space<vmem>>, %arg4: memref<1x8x192xf32, #tpu.memory_space<vmem>>) attributes {dimension_semantics = [#tpu.dimension_semantics<parallel>, #tpu.dimension_semantics<parallel>], iteration_bounds = array<i64: 2, 1>, scalar_prefetch = 0 : i64, scratch_operands = 0 : i64, tpu.core_type = #tpu.core_type<tc>, window_params = [{transform_indices = @transform_0, window_bounds = array<i64: 1, 8, 64>}, {pipeline_mode = #tpu.pipeline_mode<synchronous>, transform_indices = @transform_1, window_bounds = array<i64: 64, 192>}, {transform_indices = @transform_2, window_bounds = array<i64: 1, 8, 192>}]} {
    %c0 = arith.constant 0 : index
    %c0_0 = arith.constant 0 : index
    %c0_1 = arith.constant 0 : index
    %0 = vector.load %arg2[%c0, %c0_0, %c0_1] : memref<1x8x64xf32, #tpu.memory_space<vmem>>, vector<1x8x64xf32>
    %1 = vector.shape_cast %0 : vector<1x8x64xf32> to vector<8x64xf32>
    %c0_2 = arith.constant 0 : index
    %c0_3 = arith.constant 0 : index
    %2 = vector.load %arg3[%c0_2, %c0_3] : memref<64x192xf32, #tpu.memory_space<vmem>>, vector<64x192xf32>
    %cst = arith.constant dense<0.000000e+00> : vector<8x192xf32>
    %3 = tpu.matmul %1, %2, %cst {dimension_numbers = #tpu.dot_dimension_numbers<[1], [0], [0], [1], [0, 0, 1, 1], [], []>} : vector<8x64xf32>, vector<64x192xf32>, vector<8x192xf32> -> vector<8x192xf32>
    %c0_4 = arith.constant 0 : index
    %c0_5 = arith.constant 0 : index
    %c0_6 = arith.constant 0 : index
    %4 = vector.load %arg4[%c0_4, %c0_5, %c0_6] : memref<1x8x192xf32, #tpu.memory_space<vmem>>, vector<1x8x192xf32>
    %5 = vector.shape_cast %4 : vector<1x8x192xf32> to vector<8x192xf32>
    %6 = vector.shape_cast %3 : vector<8x192xf32> to vector<1x8x192xf32>
    tpu.vector_store %arg4[%c0_4, %c0_5, %c0_6], %6 {strides = array<i32>} : memref<1x8x192xf32, #tpu.memory_space<vmem>>, vector<1x8x192xf32>,
    return
  }
  func.func @transform_0(%arg0: i32, %arg1: i32) -> (i32, i32, i32) {
    %c0_i32 = arith.constant 0 : i32
    %c0_i32_0 = arith.constant 0 : i32
    return %arg0, %arg1, %c0_i32 : i32, i32, i32
  }
  func.func @transform_1(%arg0: i32, %arg1: i32) -> (i32, i32) {
    %c0_i32 = arith.constant 0 : i32
    %c0_i32_0 = arith.constant 0 : i32
    %c0_i32_1 = arith.constant 0 : i32
    return %c0_i32, %c0_i32_0 : i32, i32
  }
  func.func @transform_2(%arg0: i32, %arg1: i32) -> (i32, i32, i32) {
    %c0_i32 = arith.constant 0 : i32
    %c0_i32_0 = arith.constant 0 : i32
    return %arg0, %arg1, %c0_i32 : i32, i32, i32
  }
}

module attributes {stable_mosaic.version = 11 : i64} {
  func.func @_qkv_proj_kernel(%arg0: i32, %arg1: i32, %arg2: memref<1x8x64xf32, #tpu.memory_space<vmem>>, %arg3: memref<64x192xf32, #tpu.memory_space<vmem>>, %arg4: memref<1x8x192xf32, #tpu.memory_space<vmem>>) attributes {dimension_semantics = [#tpu.dimension_semantics<parallel>, #tpu.dimension_semantics<parallel>], iteration_bounds = array<i64: 2, 1>, scalar_prefetch = 0 : i64, scratch_operands = 0 : i64, tpu.core_type = #tpu.core_type<tc>, window_params = [{transform_indices = @transform_0, window_bounds = array<i64: 1, 8, 64>}, {pipeline_mode = #tpu.pipeline_mode<synchronous>, transform_indices = @transform_1, window_bounds = array<i64: 64, 192>}, {transform_indices = @transform_2, window_bounds = array<i64: 1, 8, 192>}]} {
    %c0 = arith.constant 0 : index
    %c0_0 = arith.constant 0 : index
    %c0_1 = arith.constant 0 : index
    %0 = vector.load %arg2[%c0, %c0_0, %c0_1] : memref<1x8x64xf32, #tpu.memory_space<vmem>>, vector<1x8x64xf32>
    %1 = vector.shape_cast %0 : vector<1x8x64xf32> to vector<8x64xf32>
    %c0_2 = arith.constant 0 : index
    %c0_3 = arith.constant 0 : index
    %2 = vector.load %arg3[%c0_2, %c0_3] : memref<64x192xf32, #tpu.memory_space<vmem>>, vector<64x192xf32>
    %cst = arith.constant dense<0.000000e+00> : vector<8x192xf32>
    %3 = tpu.matmul %1, %2, %cst {dimension_numbers = #tpu.dot_dimension_numbers<[1], [0], [0], [1], [0, 0, 1, 1], [], []>} : vector<8x64xf32>, vector<64x192xf32>, vector<8x192xf32> -> vector<8x192xf32>
    %c0_4 = arith.constant 0 : index
    %c0_5 = arith.constant 0 : index
    %c0_6 = arith.constant 0 : index
    %4 = vector.load %arg4[%c0_4, %c0_5, %c0_6] : memref<1x8x192xf32, #tpu.memory_space<vmem>>, vector<1x8x192xf32>
    %5 = vector.shape_cast %4 : vector<1x8x192xf32> to vector<8x192xf32>
    %6 = vector.shape_cast %3 : vector<8x192xf32> to vector<1x8x192xf32>
    tpu.vector_store %arg4[%c0_4, %c0_5, %c0_6], %6 {strides = array<i32>} : memref<1x8x192xf32, #tpu.memory_space<vmem>>, vector<1x8x192xf32>,
    return
  }
  func.func @transform_0(%arg0: i32, %arg1: i32) -> (i32, i32, i32) {
    %c0_i32 = arith.constant 0 : i32
    %c0_i32_0 = arith.constant 0 : i32
    return %arg0, %arg1, %c0_i32 : i32, i32, i32
  }
  func.func @transform_1(%arg0: i32, %arg1: i32) -> (i32, i32) {
    %c0_i32 = arith.constant 0 : i32
    %c0_i32_0 = arith.constant 0 : i32
    %c0_i32_1 = arith.constant 0 : i32
    return %c0_i32, %c0_i32_0 : i32, i32
  }
  func.func @transform_2(%arg0: i32, %arg1: i32) -> (i32, i32, i32) {
    %c0_i32 = arith.constant 0 : i32
    %c0_i32_0 = arith.constant 0 : i32
    return %arg0, %arg1, %c0_i32 : i32, i32, i32
  }
}

</mosaic_0001>

<bundles_post_ra>
// kernel: tpu_custom_call.1
= control target key start
LH: loop header
LB: loop body
LE: loop exit
PB: predicated region body
PF: predicated region fallthrough
CT: control target
= control target key end

     0   :  { %7 = vsyncpa [#allocation3], 0  ;;  %s889_s0 = inlined_call_operand.hbm [shape: f32[2,8,64], index: 0, kind: input, shape index: {}]   ;;  %s890_s1 = inlined_call_operand.hbm [shape: f32[64,192], index: 1, kind: input, shape index: {}]   ;;  %s891_s2 = inlined_call_operand.hbm [shape: f32[2,8,192], index: 2, kind: output, shape index: {}]  }
   0x1   :  { %9 = vsyncpa [#allocation3 + $0x1], 0 }
   0x2   :  { %10 = vsyncpa [#allocation6], 0 }
   0x3   :  { %11 = vsyncpa [#allocation4], 0 }
   0x4   :  { %13 = vsyncpa [#allocation4 + $0x1], 0  ;;  %s671_s9 = smov 0   ;;  %s673_s10 = smov 0  }
   0x5   :  { %s675_s11 = smov 0   ;;  %s677_s12 = smov 0  }
   0x6   :  { %s679_s13 = smov 0   ;;  %s681_s14 = smov 0  }
   0x7 LB: > { %s394_s15 = sadd.s32 4294967295, %s648_s14   ;;  %s395_s16 = sadd.s32 4294967294, %s648_s14   ;;  %s648_s14 = sphi %s681_s14, %s19_s14   ;;  %s644_s13 = sphi %s679_s13, %s915_s13   ;;  %s640_s12 = sphi %s677_s12, %s914_s12   ;;  %s636_s11 = sphi %s675_s11, %s913_s11   ;;  %s632_s10 = sphi %s673_s10, %s912_s10   ;;  %s628_s9 = sphi %s671_s9, %s911_s9  }
   0x8   : > { %p53_p0 = scmp.ne.s32.totalorder %s632_s10, %s628_s9  ;;  %p705_p1 = scmp.eq.s32.totalorder %s394_s15, 0 }
   0x9   : > { %p709_p2 = scmp.eq.s32.totalorder %s394_s15, 1  ;;  %p106_p3 = scmp.eq.s32.totalorder %s395_s16, 1 }
   0xa   : > { %s896_s17 = scalar_select %p705_p1, 1, 0 }
   0xb   : > { %s897_s18 = scalar_select %p709_p2, 1, 0 }
   0xc   : > { %p715_p4 = por %p705_p1, %p53_p0  ;;  %p396_p5 = scmp.ge.s32.totalorder %s648_s14, 1 }
   0xd   : > { %p720_p6 = por %p106_p3, %p53_p0  ;;  %p113_p7 = scmp.lt.s32.totalorder %s648_s14, 3 }
   0xe   : > { %s898_s19 = scalar_select %p715_p4, 1, 0 }
   0xf   : > { %s899_s20 = scalar_select %p720_p6, 1, 0 }
  0x10   : > { %p725_p8 = pnand %p396_p5, %p113_p7  ;;  %s650_s22 = smov [#allocation5]  }
  0x11   : > { %s125_s23 = sshll.u32 %s650_s22, 4  ;;  %s31_s25 = sadd.s32 1, %s644_s13  ;;  %s126_s23 = int_to_ptr.vmem [resolvable:$true] %s125_s23 }
  0x12   : > { %s900_s21 = scalar_select %p725_p8, 1, 0 }
  0x13   : > { %p436_p9 = pneg %p725_p8  ;;  %s504_s28 = scalar_lea.hbm %s890_s1, 2048 }
  0x14   : > { %p505_p12 = scmp.ne.s32.totalorder %s890_s1, %s504_s28  ;;  %p511_p5 = scmp.lt.u32.totalorder %s504_s28, %s890_s1 }
  0x15   : > { %p734_p11 = pnand %p436_p9, %p705_p1 }
  0x17   : > { %p506_p13 = pneg %p734_p11 }
  0x19   : > { %p507_p0 = pnand %p506_p13, %p505_p12 }
  0x1b   : > { %p508_p3 = pneg %p507_p0 }
  0x1d   : > { %p513_p7 = pnand %p511_p5, %p508_p3 }
  0x1f   : > { %516 = shalt.err (!%p513_p7)
}
  0x20   : > { %s517_s5 = scalar_lea.vmem %s126_s23, 2048  ;;  %p525_p1 = scmp.lt.s32.totalorder %s126_s23, %s126_s23 }
  0x21   : > { %p518_p9 = scmp.ne.s32.totalorder %s126_s23, %s517_s5  ;;  %p526_p4 = scmp.lt.s32.totalorder %s517_s5, %s517_s5 }
  0x23   : > { %p520_p10 = pnand %p518_p9, %p506_p13  ;;  %p527_p8 = por %p526_p4, %p525_p1 }
  0x25   : > { %p521_p6 = pneg %p520_p10 }
  0x27   : > { %p528_p2 = pnand %p527_p8, %p521_p6 }
  0x29   : > { %531 = shalt.err (!%p528_p2)
}
  0x2a   : > { %s651_s6 = smov 256   ;;  %s652_s7 = smov 16  }
  0x2b   : > { %439 = dma.hbm_to_vmem [thread:$0]  (!%p734_p11), %s890_s1, 2048, %s126_s23, [#allocation6], %s651_s6, %s651_s6, %s652_s7  }
  0x2c   : > { %p33_p1 = scmp.ge.s32.totalorder %s31_s25, 2  ;;  %s40_s16 = sadd.s32 1, %s636_s11 }
  0x2d   : > { %p47_p2 = scmp.ne.s32.totalorder %s636_s11, %s632_s10  ;;  %p48_p4 = scmp.eq.s32.totalorder %s648_s14, 0 }
  0x2e   : > { %s917_s25 = smov (%p33_p1, %s31_s25), 0  ;;  %p903_p8 = scmp.ne.s32.totalorder %s897_s18, 0 }
  0x2f   : > { %p761_p6 = por %p48_p4, %p47_p2  ;;  %s35_s24 = ssub.s32 %s644_s13, %s917_s25 }
  0x30   : > { %p767_p10 = por %p903_p8, %p47_p2  ;;  %p449_p12 = scmp.lt.s32.totalorder %s648_s14, 2 }
  0x31   : > { %p38_p11 = scmp.eq.s32.totalorder %s35_s24, 0  ;;  %s139_s23 = sand.u32 1, %s636_s11  }
  0x32   : > { %s399_s27 = sshll.u32 %s139_s23, 3  ;;  %s400_s29 = sshll.u32 %s644_s13, 7 }
  0x33   : > { %s776_s28 = scalar_select %p38_p11, %s636_s11, %s40_s16  }
  0x34   : > { %s782_s4 = scalar_lea.hbm %s889_s0, %s400_s29  ;;  %s143_s18 = scalar_lea.vmem [#allocation2], %s399_s27 }
  0x35   : > { %s151_s5 = sshll.u32 %s143_s18, 4  ;;  %p788_p13 = pnand %p449_p12, %p761_p6  ;;  %s784_s5 = int_to_ptr.vmem [resolvable:$true] %s151_s5 }
  0x36   : > { %s140_s7 = scalar_lea.sflag [#allocation3], %s139_s23  ;;  %s532_s8 = scalar_lea.hbm %s782_s4, 128 }
  0x37   : > { %p533_p0 = scmp.ne.s32.totalorder %s782_s4, %s532_s8  ;;  %p534_p3 = pneg %p788_p13 }
  0x38   : > { %s537_s24 = scalar_lea.hbm %s889_s0, 256  ;;  %p538_p9 = scmp.lt.u32.totalorder %s782_s4, %s889_s0 }
  0x39   : > { %p535_p5 = pnand %p534_p3, %p533_p0  ;;  %p539_p1 = scmp.lt.u32.totalorder %s537_s24, %s532_s8 }
  0x3a   : > { %p541_p4 = scmp.lt.u32.totalorder %s532_s8, %s782_s4 }
  0x3b   : > { %p536_p7 = pneg %p535_p5  ;;  %p540_p2 = por %p539_p1, %p538_p9 }
  0x3d   : > { %p542_p6 = por %p541_p4, %p540_p2 }
  0x3f   : > { %p543_p8 = pnand %p542_p6, %p536_p7 }
  0x41   : > { %546 = shalt.err (!%p543_p8)
}
  0x42   : > { %s547_s23 = scalar_lea.vmem %s784_s5, 128  ;;  %s653_s29 = smov [#allocation2]  }
  0x43   : > { %p548_p12 = scmp.ne.s32.totalorder %s784_s5, %s547_s23  ;;  %s552_s30 = sshll.u32 %s653_s29, 4  ;;  %s553_s30 = int_to_ptr.vmem [resolvable:$false] %s552_s30 }
  0x44   : > { %s554_s3 = scalar_lea.vmem %s553_s30, 256  ;;  %p555_p5 = scmp.lt.s32.totalorder %s784_s5, %s553_s30 }
  0x45   : > { %p550_p11 = pnand %p548_p12, %p534_p3  ;;  %p556_p9 = scmp.lt.s32.totalorder %s554_s3, %s547_s23 }
  0x47   : > { %p551_p0 = pneg %p550_p11  ;;  %p557_p1 = por %p556_p9, %p555_p5 }
  0x49   : > { %p558_p2 = pnand %p557_p1, %p551_p0 }
  0x4b   : > { %561 = shalt.err (!%p558_p2)
}
  0x4c   : > { %443 = dma.hbm_to_vmem [thread:$0]  (!%p788_p13), %s782_s4, 128, %s784_s5, %s140_s7  }
  0x4d   : > { %p906_p7 = scmp.ne.s32.totalorder %s900_s21, 0 }
  0x4e   : > { %s820_s18 = sand.u32 (!%p906_p7), 1, %s632_s10   ;;  %p907_p3 = scmp.ne.s32.totalorder (!%p906_p7), %s898_s19, 0 }
  0x4f   : > { %160 = sbr.rel (%p906_p7) target bundleno = 336 (0x150), region = 28  ;;  %s402_s8 = sshll.u32 (!%p906_p7), %s820_s18, 3 }
  0x50   : > { %s163_s15 = scalar_lea.sflag (!%p906_p7), [#allocation3], %s820_s18  ;;  %s824_s16 = scalar_lea.vmem (!%p906_p7), [#allocation2], %s402_s8 }
  0x56   : > { %615 = dma.done.wait (%p907_p3), %s163_s15, 128  }
  0x57   : > { %617 = vsyncadd (%p907_p3), %s163_s15, 4294967168  ;;  %p908_p13 = scmp.ne.s32.totalorder %s896_s17, 0 }
  0x59   : > { %619 = dma.done.wait (%p908_p13), [#allocation6], 2048  }
  0x5a   : > { %621 = vsyncadd (%p908_p13), [#allocation6], 4294965248  ;;  %v654_v0 = vmov 0.0   ;;  %v193_v1 = vld [vmem:[#allocation5 + $0x8] sm:$0xff]  ;;  %v195_v2 = vld [vmem:[#allocation5 + $0x18] sm:$0xff]  ;;  %vm208_vm0 = vcmask 523264  }
  0x5b   : > { %276 = vmatprep.mubr.f32.mxu0 %v654_v0  ;;  %v192_v3 = vld [vmem:[#allocation5] sm:$0xff]  ;;  %v412_v4 = vpack.c.bf16 %v195_v2, %v193_v1  ;;  %v194_v5 = vld [vmem:[#allocation5 + $0x10] sm:$0xff]  ;;  %v197_v6 = vld [vmem:[#allocation5 + $0x28] sm:$0xff]  ;;  %s404_s17 = sshll.u32 %s820_s18, 4  ;;  %s411_s4 = sshll.u32 %s640_s12, 8 }
  0x5c   : > { %v199_v7 = vld [vmem:[#allocation5 + $0x38] sm:$0xff]  ;;  %v414_v8 = vpack.c.bf16 %v194_v5, %v192_v3  ;;  %v196_v10 = vld [vmem:[#allocation5 + $0x20] sm:$0xff]  ;;  %v198_v11 = vld [vmem:[#allocation5 + $0x30] sm:$0xff]  ;;  %s190_s19 = scalar_lea.vmem [#allocation7], %s404_s17  ;;  %s842_s7 = scalar_lea.hbm %s891_s2, %s411_s4 }
  0x5d   : > { %v416_v9 = vpack.c.bf16 %v199_v7, %v197_v6  ;;  %v201_v12 = vld [vmem:[#allocation5 + $0x48] sm:$0xff]  ;;  %413 = vmatprep.subr.bf16.mxu0 %v412_v4  ;;  %v203_v13 = vld [vmem:[#allocation5 + $0x58] sm:$0xff]  ;;  %v418_v14 = vpack.c.bf16 %v198_v11, %v196_v10  ;;  %v200_v16 = vld [vmem:[#allocation5 + $0x40] sm:$0xff]  ;;  %s302_s21 = sshll.u32 %s190_s19, 4  ;;  %s286_s24 = scalar_lea.sflag [#allocation4], %s820_s18  ;;  %s837_s21 = int_to_ptr.vmem [resolvable:$true] %s302_s21 }
  0x5e   : > { %415 = vmatpush1.bf16.msra.mxu0 %v414_v8  ;;  %v420_v15 = vpack.c.bf16 %v203_v13, %v201_v12  ;;  %v202_v17 = vld [vmem:[#allocation5 + $0x50] sm:$0xff]  ;;  %v205_v18 = vld [vmem:[#allocation5 + $0x68] sm:$0xff]  ;;  %v207_v19 = vld [vmem:[#allocation5 + $0x78] sm:$0xff]  ;;  %s562_s22 = scalar_lea.vmem %s837_s21, 256  ;;  %s655_s12 = smov [#allocation7]  }
  0x5f   : > { %417 = vmatprep.subr.bf16.mxu0 %v416_v9  ;;  %v422_v20 = vpack.c.bf16 %v202_v17, %v200_v16  ;;  %v424_v21 = vpack.c.bf16 %v207_v19, %v205_v18  ;;  %v204_v22 = vld [vmem:[#allocation5 + $0x60] sm:$0xff]  ;;  %v206_v23 = vld [vmem:[#allocation5 + $0x70] sm:$0xff]  ;;  %p563_p4 = scmp.ne.s32.totalorder %s837_s21, %s562_s22  ;;  %s566_s27 = sshll.u32 %s655_s12, 4  ;;  %s567_s27 = int_to_ptr.vmem [resolvable:$false] %s566_s27 }
  0x60   : > { %v426_v24 = vpack.c.bf16 %v206_v23, %v204_v22  ;;  %v191_v25 = vld [vmem:[%s824_s16] sm:$0xff]  ;;  %s568_s23 = scalar_lea.vmem %s567_s27, 512  ;;  %p569_p12 = scmp.lt.s32.totalorder %s837_s21, %s567_s27 }
  0x61   : > { %p564_p6 = pnand %p563_p4, %p767_p10  ;;  %p570_p11 = scmp.lt.s32.totalorder %s568_s23, %s562_s22 }
  0x62   : > { %419 = vmatpush1.bf16.msra.mxu0 %v418_v14 }
  0x63   : > { %421 = vmatprep.subr.bf16.mxu0 %v420_v15  ;;  %p565_p8 = pneg %p564_p6  ;;  %p571_p0 = por %p570_p11, %p569_p12 }
  0x65   : > { %p572_p5 = pnand %p571_p0, %p565_p8 }
  0x66   : > { %423 = vmatpush1.bf16.msra.mxu0 %v422_v20 }
  0x67   : > { %425 = vmatprep.subr.bf16.mxu0 %v424_v21 }
  0x6a   : > { %427 = vmatpush1.bf16.msra.mxu0 %v426_v24 }
  0x6d   : > { %405 = vmatmul.mubr.msk.f32.vlgmr.msra.gmra.mrb[0].mxu0 %vm208_vm0, %v191_v25 }
 0x140   : > { %v278_v26 = vpop.f32.mrb[0].mxu0 }
 0x141   : > { %283 = vst [vmem:[%s190_s19] sm:$0xff] %v278_v26  ;;  %v280_v27 = vpop.f32.mrb[1].mxu0 }
 0x142   : > { %284 = vst.msk [vmem:[%s190_s19 + $0x8] sm:$0xff] %vm208_vm0, %v280_v27 }
 0x143   : > { %575 = shalt.err (!%p572_p5)
}
 0x144   : > { %s576_s29 = scalar_lea.hbm %s842_s7, 256  ;;  %s580_s18 = scalar_lea.hbm %s891_s2, 512 }
 0x145   : > { %p577_p9 = scmp.ne.s32.totalorder %s842_s7, %s576_s29  ;;  %p581_p7 = scmp.lt.u32.totalorder %s842_s7, %s891_s2 }
 0x146   : > { %p582_p3 = scmp.lt.u32.totalorder %s580_s18, %s576_s29  ;;  %p584_p4 = scmp.lt.u32.totalorder %s576_s29, %s842_s7 }
 0x147   : > { %p578_p1 = pnand %p577_p9, %p767_p10 }
 0x148   : > { %p583_p13 = por %p582_p3, %p581_p7 }
 0x149   : > { %p579_p2 = pneg %p578_p1 }
 0x14a   : > { %p585_p6 = por %p584_p4, %p583_p13 }
 0x14c   : > { %p586_p8 = pnand %p585_p6, %p579_p2 }
 0x14e   : > { %589 = shalt.err (!%p586_p8)
}
 0x14f   : > { %434 = dma.vmem_to_hbm [thread:$0]  (%p767_p10), %s837_s21, 256, %s842_s7, %s286_s24  }
 0x150 PF: > { %s314_s16 = sand.u32 1, %s628_s9   ;;  %p909_p12 = scmp.ne.s32.totalorder %s899_s20, 0 }
 0x151   : > { %p910_p11 = scmp.ge.s32.totalorder %s648_s14, 2  ;;  %s315_s17 = scalar_lea.sflag [#allocation4], %s314_s16 }
 0x153   : > { %p445_p0 = pnand %p910_p11, %p909_p12 }
 0x155   : > { %623 = dma.done.wait (!%p445_p0), %s315_s17, 256  }
 0x156   : > { %625 = vsyncadd (!%p445_p0), %s315_s17, 4294967040  ;;  %s19_s14 = sadd.s32 1, %s648_s14   ;;  %s911_s9 = smov %s632_s10 }
 0x157   : > { %p16_p5 = scmp.ge.s32.totalorder %s19_s14, 4   ;;  %s912_s10 = smov %s636_s11 }
 0x158   : > { %s913_s11 = smov %s776_s28  ;;  %s914_s12 = smov %s644_s13 }
 0x159   : > { %s915_s13 = smov %s917_s25  ;;  %18 = sbr.rel (!%p16_p5) target bundleno = 7 (0x7), region = 77 }
 0x160   :  { %320 = vsyncpa [#allocation3], 1 }
 0x161   :  { %322 = vsyncpa [#allocation3 + $0x1], 1 }
 0x162   :  { %323 = vsyncpa [#allocation6], 1 }
 0x163   :  { %324 = vsyncpa [#allocation4], 1 }
 0x164   :  { %326 = vsyncpa [#allocation4 + $0x1], 1 }

// kernel: tpu_custom_call.1
= control target key start
LH: loop header
LB: loop body
LE: loop exit
PB: predicated region body
PF: predicated region fallthrough
CT: control target
= control target key end

     0   :  { %7 = vsyncpa [#allocation3], 0  ;;  %s889_s0 = inlined_call_operand.hbm [shape: f32[2,8,64], index: 0, kind: input, shape index: {}]   ;;  %s890_s1 = inlined_call_operand.hbm [shape: f32[64,192], index: 1, kind: input, shape index: {}]   ;;  %s891_s2 = inlined_call_operand.hbm [shape: f32[2,8,192], index: 2, kind: output, shape index: {}]  }
   0x1   :  { %9 = vsyncpa [#allocation3 + $0x1], 0 }
   0x2   :  { %10 = vsyncpa [#allocation6], 0 }
   0x3   :  { %11 = vsyncpa [#allocation4], 0 }
   0x4   :  { %13 = vsyncpa [#allocation4 + $0x1], 0  ;;  %s671_s9 = smov 0   ;;  %s673_s10 = smov 0  }
   0x5   :  { %s675_s11 = smov 0   ;;  %s677_s12 = smov 0  }
   0x6   :  { %s679_s13 = smov 0   ;;  %s681_s14 = smov 0  }
   0x7 LB: > { %s394_s15 = sadd.s32 4294967295, %s648_s14   ;;  %s395_s16 = sadd.s32 4294967294, %s648_s14   ;;  %s648_s14 = sphi %s681_s14, %s19_s14   ;;  %s644_s13 = sphi %s679_s13, %s915_s13   ;;  %s640_s12 = sphi %s677_s12, %s914_s12   ;;  %s636_s11 = sphi %s675_s11, %s913_s11   ;;  %s632_s10 = sphi %s673_s10, %s912_s10   ;;  %s628_s9 = sphi %s671_s9, %s911_s9  }
   0x8   : > { %p53_p0 = scmp.ne.s32.totalorder %s632_s10, %s628_s9  ;;  %p705_p1 = scmp.eq.s32.totalorder %s394_s15, 0 }
   0x9   : > { %p709_p2 = scmp.eq.s32.totalorder %s394_s15, 1  ;;  %p106_p3 = scmp.eq.s32.totalorder %s395_s16, 1 }
   0xa   : > { %s896_s17 = scalar_select %p705_p1, 1, 0 }
   0xb   : > { %s897_s18 = scalar_select %p709_p2, 1, 0 }
   0xc   : > { %p715_p4 = por %p705_p1, %p53_p0  ;;  %p396_p5 = scmp.ge.s32.totalorder %s648_s14, 1 }
   0xd   : > { %p720_p6 = por %p106_p3, %p53_p0  ;;  %p113_p7 = scmp.lt.s32.totalorder %s648_s14, 3 }
   0xe   : > { %s898_s19 = scalar_select %p715_p4, 1, 0 }
   0xf   : > { %s899_s20 = scalar_select %p720_p6, 1, 0 }
  0x10   : > { %p725_p8 = pnand %p396_p5, %p113_p7  ;;  %s650_s22 = smov [#allocation5]  }
  0x11   : > { %s125_s23 = sshll.u32 %s650_s22, 4  ;;  %s31_s25 = sadd.s32 1, %s644_s13  ;;  %s126_s23 = int_to_ptr.vmem [resolvable:$true] %s125_s23 }
  0x12   : > { %s900_s21 = scalar_select %p725_p8, 1, 0 }
  0x13   : > { %p436_p9 = pneg %p725_p8  ;;  %s504_s28 = scalar_lea.hbm %s890_s1, 2048 }
  0x14   : > { %p505_p12 = scmp.ne.s32.totalorder %s890_s1, %s504_s28  ;;  %p511_p5 = scmp.lt.u32.totalorder %s504_s28, %s890_s1 }
  0x15   : > { %p734_p11 = pnand %p436_p9, %p705_p1 }
  0x17   : > { %p506_p13 = pneg %p734_p11 }
  0x19   : > { %p507_p0 = pnand %p506_p13, %p505_p12 }
  0x1b   : > { %p508_p3 = pneg %p507_p0 }
  0x1d   : > { %p513_p7 = pnand %p511_p5, %p508_p3 }
  0x1f   : > { %516 = shalt.err (!%p513_p7)
}
  0x20   : > { %s517_s5 = scalar_lea.vmem %s126_s23, 2048  ;;  %p525_p1 = scmp.lt.s32.totalorder %s126_s23, %s126_s23 }
  0x21   : > { %p518_p9 = scmp.ne.s32.totalorder %s126_s23, %s517_s5  ;;  %p526_p4 = scmp.lt.s32.totalorder %s517_s5, %s517_s5 }
  0x23   : > { %p520_p10 = pnand %p518_p9, %p506_p13  ;;  %p527_p8 = por %p526_p4, %p525_p1 }
  0x25   : > { %p521_p6 = pneg %p520_p10 }
  0x27   : > { %p528_p2 = pnand %p527_p8, %p521_p6 }
  0x29   : > { %531 = shalt.err (!%p528_p2)
}
  0x2a   : > { %s651_s6 = smov 256   ;;  %s652_s7 = smov 16  }
  0x2b   : > { %439 = dma.hbm_to_vmem [thread:$0]  (!%p734_p11), %s890_s1, 2048, %s126_s23, [#allocation6], %s651_s6, %s651_s6, %s652_s7  }
  0x2c   : > { %p33_p1 = scmp.ge.s32.totalorder %s31_s25, 2  ;;  %s40_s16 = sadd.s32 1, %s636_s11 }
  0x2d   : > { %p47_p2 = scmp.ne.s32.totalorder %s636_s11, %s632_s10  ;;  %p48_p4 = scmp.eq.s32.totalorder %s648_s14, 0 }
  0x2e   : > { %s917_s25 = smov (%p33_p1, %s31_s25), 0  ;;  %p903_p8 = scmp.ne.s32.totalorder %s897_s18, 0 }
  0x2f   : > { %p761_p6 = por %p48_p4, %p47_p2  ;;  %s35_s24 = ssub.s32 %s644_s13, %s917_s25 }
  0x30   : > { %p767_p10 = por %p903_p8, %p47_p2  ;;  %p449_p12 = scmp.lt.s32.totalorder %s648_s14, 2 }
  0x31   : > { %p38_p11 = scmp.eq.s32.totalorder %s35_s24, 0  ;;  %s139_s23 = sand.u32 1, %s636_s11  }
  0x32   : > { %s399_s27 = sshll.u32 %s139_s23, 3  ;;  %s400_s29 = sshll.u32 %s644_s13, 7 }
  0x33   : > { %s776_s28 = scalar_select %p38_p11, %s636_s11, %s40_s16  }
  0x34   : > { %s782_s4 = scalar_lea.hbm %s889_s0, %s400_s29  ;;  %s143_s18 = scalar_lea.vmem [#allocation2], %s399_s27 }
  0x35   : > { %s151_s5 = sshll.u32 %s143_s18, 4  ;;  %p788_p13 = pnand %p449_p12, %p761_p6  ;;  %s784_s5 = int_to_ptr.vmem [resolvable:$true] %s151_s5 }
  0x36   : > { %s140_s7 = scalar_lea.sflag [#allocation3], %s139_s23  ;;  %s532_s8 = scalar_lea.hbm %s782_s4, 128 }
  0x37   : > { %p533_p0 = scmp.ne.s32.totalorder %s782_s4, %s532_s8  ;;  %p534_p3 = pneg %p788_p13 }
  0x38   : > { %s537_s24 = scalar_lea.hbm %s889_s0, 256  ;;  %p538_p9 = scmp.lt.u32.totalorder %s782_s4, %s889_s0 }
  0x39   : > { %p535_p5 = pnand %p534_p3, %p533_p0  ;;  %p539_p1 = scmp.lt.u32.totalorder %s537_s24, %s532_s8 }
  0x3a   : > { %p541_p4 = scmp.lt.u32.totalorder %s532_s8, %s782_s4 }
  0x3b   : > { %p536_p7 = pneg %p535_p5  ;;  %p540_p2 = por %p539_p1, %p538_p9 }
  0x3d   : > { %p542_p6 = por %p541_p4, %p540_p2 }
  0x3f   : > { %p543_p8 = pnand %p542_p6, %p536_p7 }
  0x41   : > { %546 = shalt.err (!%p543_p8)
}
  0x42   : > { %s547_s23 = scalar_lea.vmem %s784_s5, 128  ;;  %s653_s29 = smov [#allocation2]  }
  0x43   : > { %p548_p12 = scmp.ne.s32.totalorder %s784_s5, %s547_s23  ;;  %s552_s30 = sshll.u32 %s653_s29, 4  ;;  %s553_s30 = int_to_ptr.vmem [resolvable:$false] %s552_s30 }
  0x44   : > { %s554_s3 = scalar_lea.vmem %s553_s30, 256  ;;  %p555_p5 = scmp.lt.s32.totalorder %s784_s5, %s553_s30 }
  0x45   : > { %p550_p11 = pnand %p548_p12, %p534_p3  ;;  %p556_p9 = scmp.lt.s32.totalorder %s554_s3, %s547_s23 }
  0x47   : > { %p551_p0 = pneg %p550_p11  ;;  %p557_p1 = por %p556_p9, %p555_p5 }
  0x49   : > { %p558_p2 = pnand %p557_p1, %p551_p0 }
  0x4b   : > { %561 = shalt.err (!%p558_p2)
}
  0x4c   : > { %443 = dma.hbm_to_vmem [thread:$0]  (!%p788_p13), %s782_s4, 128, %s784_s5, %s140_s7  }
  0x4d   : > { %p906_p7 = scmp.ne.s32.totalorder %s900_s21, 0 }
  0x4e   : > { %s820_s18 = sand.u32 (!%p906_p7), 1, %s632_s10   ;;  %p907_p3 = scmp.ne.s32.totalorder (!%p906_p7), %s898_s19, 0 }
  0x4f   : > { %160 = sbr.rel (%p906_p7) target bundleno = 336 (0x150), region = 28  ;;  %s402_s8 = sshll.u32 (!%p906_p7), %s820_s18, 3 }
  0x50   : > { %s163_s15 = scalar_lea.sflag (!%p906_p7), [#allocation3], %s820_s18  ;;  %s824_s16 = scalar_lea.vmem (!%p906_p7), [#allocation2], %s402_s8 }
  0x56   : > { %615 = dma.done.wait (%p907_p3), %s163_s15, 128  }
  0x57   : > { %617 = vsyncadd (%p907_p3), %s163_s15, 4294967168  ;;  %p908_p13 = scmp.ne.s32.totalorder %s896_s17, 0 }
  0x59   : > { %619 = dma.done.wait (%p908_p13), [#allocation6], 2048  }
  0x5a   : > { %621 = vsyncadd (%p908_p13), [#allocation6], 4294965248  ;;  %v654_v0 = vmov 0.0   ;;  %v193_v1 = vld [vmem:[#allocation5 + $0x8] sm:$0xff]  ;;  %v195_v2 = vld [vmem:[#allocation5 + $0x18] sm:$0xff]  ;;  %vm208_vm0 = vcmask 523264  }
  0x5b   : > { %276 = vmatprep.mubr.f32.mxu0 %v654_v0  ;;  %v192_v3 = vld [vmem:[#allocation5] sm:$0xff]  ;;  %v412_v4 = vpack.c.bf16 %v195_v2, %v193_v1  ;;  %v194_v5 = vld [vmem:[#allocation5 + $0x10] sm:$0xff]  ;;  %v197_v6 = vld [vmem:[#allocation5 + $0x28] sm:$0xff]  ;;  %s404_s17 = sshll.u32 %s820_s18, 4  ;;  %s411_s4 = sshll.u32 %s640_s12, 8 }
  0x5c   : > { %v199_v7 = vld [vmem:[#allocation5 + $0x38] sm:$0xff]  ;;  %v414_v8 = vpack.c.bf16 %v194_v5, %v192_v3  ;;  %v196_v10 = vld [vmem:[#allocation5 + $0x20] sm:$0xff]  ;;  %v198_v11 = vld [vmem:[#allocation5 + $0x30] sm:$0xff]  ;;  %s190_s19 = scalar_lea.vmem [#allocation7], %s404_s17  ;;  %s842_s7 = scalar_lea.hbm %s891_s2, %s411_s4 }
  0x5d   : > { %v416_v9 = vpack.c.bf16 %v199_v7, %v197_v6  ;;  %v201_v12 = vld [vmem:[#allocation5 + $0x48] sm:$0xff]  ;;  %413 = vmatprep.subr.bf16.mxu0 %v412_v4  ;;  %v203_v13 = vld [vmem:[#allocation5 + $0x58] sm:$0xff]  ;;  %v418_v14 = vpack.c.bf16 %v198_v11, %v196_v10  ;;  %v200_v16 = vld [vmem:[#allocation5 + $0x40] sm:$0xff]  ;;  %s302_s21 = sshll.u32 %s190_s19, 4  ;;  %s286_s24 = scalar_lea.sflag [#allocation4], %s820_s18  ;;  %s837_s21 = int_to_ptr.vmem [resolvable:$true] %s302_s21 }
  0x5e   : > { %415 = vmatpush1.bf16.msra.mxu0 %v414_v8  ;;  %v420_v15 = vpack.c.bf16 %v203_v13, %v201_v12  ;;  %v202_v17 = vld [vmem:[#allocation5 + $0x50] sm:$0xff]  ;;  %v205_v18 = vld [vmem:[#allocation5 + $0x68] sm:$0xff]  ;;  %v207_v19 = vld [vmem:[#allocation5 + $0x78] sm:$0xff]  ;;  %s562_s22 = scalar_lea.vmem %s837_s21, 256  ;;  %s655_s12 = smov [#allocation7]  }
  0x5f   : > { %417 = vmatprep.subr.bf16.mxu0 %v416_v9  ;;  %v422_v20 = vpack.c.bf16 %v202_v17, %v200_v16  ;;  %v424_v21 = vpack.c.bf16 %v207_v19, %v205_v18  ;;  %v204_v22 = vld [vmem:[#allocation5 + $0x60] sm:$0xff]  ;;  %v206_v23 = vld [vmem:[#allocation5 + $0x70] sm:$0xff]  ;;  %p563_p4 = scmp.ne.s32.totalorder %s837_s21, %s562_s22  ;;  %s566_s27 = sshll.u32 %s655_s12, 4  ;;  %s567_s27 = int_to_ptr.vmem [resolvable:$false] %s566_s27 }
  0x60   : > { %v426_v24 = vpack.c.bf16 %v206_v23, %v204_v22  ;;  %v191_v25 = vld [vmem:[%s824_s16] sm:$0xff]  ;;  %s568_s23 = scalar_lea.vmem %s567_s27, 512  ;;  %p569_p12 = scmp.lt.s32.totalorder %s837_s21, %s567_s27 }
  0x61   : > { %p564_p6 = pnand %p563_p4, %p767_p10  ;;  %p570_p11 = scmp.lt.s32.totalorder %s568_s23, %s562_s22 }
  0x62   : > { %419 = vmatpush1.bf16.msra.mxu0 %v418_v14 }
  0x63   : > { %421 = vmatprep.subr.bf16.mxu0 %v420_v15  ;;  %p565_p8 = pneg %p564_p6  ;;  %p571_p0 = por %p570_p11, %p569_p12 }
  0x65   : > { %p572_p5 = pnand %p571_p0, %p565_p8 }
  0x66   : > { %423 = vmatpush1.bf16.msra.mxu0 %v422_v20 }
  0x67   : > { %425 = vmatprep.subr.bf16.mxu0 %v424_v21 }
  0x6a   : > { %427 = vmatpush1.bf16.msra.mxu0 %v426_v24 }
  0x6d   : > { %405 = vmatmul.mubr.msk.f32.vlgmr.msra.gmra.mrb[0].mxu0 %vm208_vm0, %v191_v25 }
 0x140   : > { %v278_v26 = vpop.f32.mrb[0].mxu0 }
 0x141   : > { %283 = vst [vmem:[%s190_s19] sm:$0xff] %v278_v26  ;;  %v280_v27 = vpop.f32.mrb[1].mxu0 }
 0x142   : > { %284 = vst.msk [vmem:[%s190_s19 + $0x8] sm:$0xff] %vm208_vm0, %v280_v27 }
 0x143   : > { %575 = shalt.err (!%p572_p5)
}
 0x144   : > { %s576_s29 = scalar_lea.hbm %s842_s7, 256  ;;  %s580_s18 = scalar_lea.hbm %s891_s2, 512 }
 0x145   : > { %p577_p9 = scmp.ne.s32.totalorder %s842_s7, %s576_s29  ;;  %p581_p7 = scmp.lt.u32.totalorder %s842_s7, %s891_s2 }
 0x146   : > { %p582_p3 = scmp.lt.u32.totalorder %s580_s18, %s576_s29  ;;  %p584_p4 = scmp.lt.u32.totalorder %s576_s29, %s842_s7 }
 0x147   : > { %p578_p1 = pnand %p577_p9, %p767_p10 }
 0x148   : > { %p583_p13 = por %p582_p3, %p581_p7 }
 0x149   : > { %p579_p2 = pneg %p578_p1 }
 0x14a   : > { %p585_p6 = por %p584_p4, %p583_p13 }
 0x14c   : > { %p586_p8 = pnand %p585_p6, %p579_p2 }
 0x14e   : > { %589 = shalt.err (!%p586_p8)
}
 0x14f   : > { %434 = dma.vmem_to_hbm [thread:$0]  (%p767_p10), %s837_s21, 256, %s842_s7, %s286_s24  }
 0x150 PF: > { %s314_s16 = sand.u32 1, %s628_s9   ;;  %p909_p12 = scmp.ne.s32.totalorder %s899_s20, 0 }
 0x151   : > { %p910_p11 = scmp.ge.s32.totalorder %s648_s14, 2  ;;  %s315_s17 = scalar_lea.sflag [#allocation4], %s314_s16 }
 0x153   : > { %p445_p0 = pnand %p910_p11, %p909_p12 }
 0x155   : > { %623 = dma.done.wait (!%p445_p0), %s315_s17, 256  }
 0x156   : > { %625 = vsyncadd (!%p445_p0), %s315_s17, 4294967040  ;;  %s19_s14 = sadd.s32 1, %s648_s14   ;;  %s911_s9 = smov %s632_s10 }
 0x157   : > { %p16_p5 = scmp.ge.s32.totalorder %s19_s14, 4   ;;  %s912_s10 = smov %s636_s11 }
 0x158   : > { %s913_s11 = smov %s776_s28  ;;  %s914_s12 = smov %s644_s13 }
 0x159   : > { %s915_s13 = smov %s917_s25  ;;  %18 = sbr.rel (!%p16_p5) target bundleno = 7 (0x7), region = 77 }
 0x160   :  { %320 = vsyncpa [#allocation3], 1 }
 0x161   :  { %322 = vsyncpa [#allocation3 + $0x1], 1 }
 0x162   :  { %323 = vsyncpa [#allocation6], 1 }
 0x163   :  { %324 = vsyncpa [#allocation4], 1 }
 0x164   :  { %326 = vsyncpa [#allocation4 + $0x1], 1 }

</bundles_post_ra>
